<compile_context>
chip_gen: v7x
topology: tpu7x:2x2x1
jax: 0.10.0
libtpu: 0.0.40
codegen_flags: <defaults>
</compile_context>

<pallas_src>
import functools

import jax
import jax.numpy as jnp
from jax.experimental import pallas as pl
from jax.experimental.pallas import tpu as pltpu


# ---------------------------------------------------------------------------
# Kernels
# ---------------------------------------------------------------------------

def _residual_kernel_resident(x_ref, w_ref, b_ref, o_ref):
    """o = (x @ W + b) + x for one row tile; bf16 W fully resident in VMEM."""
    x = x_ref[...]                                              # (tm, D)
    y = jnp.dot(x.astype(jnp.bfloat16), w_ref[...],
                preferred_element_type=jnp.float32)             # MXU, f32 acc
    o_ref[...] = (y + b_ref[...] + x).astype(o_ref.dtype)       # VPU, f32


def _residual_kernel_coltile(x_ref, w_ref, b_ref, o_ref, x_bf16_ref, *, tn):
    """Column-tiled variant: W slab (D, tn); residual sliced from resident LHS."""
    j = pl.program_id(1)

    # Cast the (tm, D) LHS to bf16 once per row tile, reuse for every column.
    @pl.when(j == 0)
    def _():
        x_bf16_ref[...] = x_ref[...].astype(jnp.bfloat16)

    y = jnp.dot(x_bf16_ref[...], w_ref[...],
                preferred_element_type=jnp.float32)             # (tm, tn) f32

    # Residual columns: 128-aligned lane slice of the resident LHS (no extra
    # HBM read of x for the residual).
    off = pl.multiple_of(j * tn, 128)
    x_res = x_ref[:, pl.ds(off, tn)]
    o_ref[...] = (y + b_ref[...] + x_res).astype(o_ref.dtype)


# ---------------------------------------------------------------------------
# Hardware-aware budgets / tiling helpers (all trace-time Python)
# ---------------------------------------------------------------------------

def _vmem_capacity_bytes():
    try:
        return int(pltpu.get_tpu_info().vmem_capacity_bytes)
    except Exception:
        return 128 * 1024 * 1024


def _hw_budget():
    """(scoped vmem limit, resident-W byte threshold, is_small_vmem/v7x)."""
    cap = _vmem_capacity_bytes()
    if cap <= 64 * 1024 * 1024:                 # v7x-class: 64 MiB per TC
        vmem_limit = 48 * 1024 * 1024
        resident_w_limit = 12 * 1024 * 1024
        small_vmem = True
    else:                                       # v5e / v6e: 128 MiB
        vmem_limit = 96 * 1024 * 1024
        resident_w_limit = 32 * 1024 * 1024
        small_vmem = False
    return min(vmem_limit, cap * 3 // 4), resident_w_limit, small_vmem


def _largest_divisor_mult8(n, cap):
    """Largest divisor of n (n % 8 == 0) that is a multiple of 8 and <= cap."""
    best = 8
    i = 1
    while i * i <= n:
        if n % i == 0:
            for d in (i, n // i):
                if d % 8 == 0 and d <= cap and d > best:
                    best = d
        i += 1
    return best


# ---------------------------------------------------------------------------
# Forward
# ---------------------------------------------------------------------------

@functools.partial(jax.jit, static_argnames=("tm", "tn", "alias_input"))
def residual_forward(x, w, b, *, tm=None, tn=None, alias_input=False):
    """Residual(Linear) forward: fn(x) + x, fused in one Pallas TPU kernel.

    x: (B, S, D) f32 or bf16 | w: (D, D) | b: (D,)
    """
    B, S, D = x.shape
    M = B * S
    assert D % 128 == 0, "feature dim must be lane-aligned (multiple of 128)"
    # TODO(synk): pad/mask the lane dim for D not a multiple of 128.

    vmem_limit, resident_w_limit, small_vmem = _hw_budget()
    budget = int(vmem_limit * 0.9)

    # ---- column tile: keep W fully resident while its bf16 copy is cheap ----
    if tn is None:
        if D * D * 2 <= resident_w_limit:
            tn = D
        else:
            tn = 512 if D % 512 == 0 else (256 if D % 256 == 0 else 128)
    assert D % tn == 0 and tn % 128 == 0, "bad column tile"
    n_col = D // tn
    resident = n_col == 1

    # ---- rows: pad to a multiple of 8, then pick the biggest tile that fits -
    M_pad = -(-M // 8) * 8

    tm_req = 512 if tm is None else tm
    tm_req = max(8, (tm_req // 8) * 8)

    def fits(t):
        if resident:
            # 2x x-tile (f32, double-buffered) + W bf16 (single-buffered)
            # + 2x out tile (f32); bias negligible.
            return 16 * t * D + 2 * D * D <= budget
        # 2x (tm, D) f32 LHS + (tm, D) bf16 scratch + 2x bf16 W slab
        # + 2x (tm, tn) f32 out.
        return 10 * t * D + 4 * D * tn + 8 * t * tn <= budget

    while tm_req > 8 and not fits(tm_req):
        tm_req //= 2

    # v7x has two TensorCores: give the (parallel) row axis >= 2 steps.
    if small_vmem and M_pad >= 16 and tm_req >= M_pad:
        tm_req = M_pad // 2

    tm = _largest_divisor_mult8(M_pad, max(8, tm_req))
    if tm < min(128, tm_req) and M_pad > 256:
        # Awkward row count: pad a few extra rows instead of degrading to tiny
        # tiles (grid-step overhead + masked stores).
        tm = max(8, (min(256, tm_req) // 8) * 8)
        M_pad = -(-M // tm) * tm
    n_row = M_pad // tm

    # ---- layout plumbing -----------------------------------------------------
    x2 = x.reshape(M, D)
    if M_pad != M:
        x2 = jnp.pad(x2, ((0, M_pad - M), (0, 0)))
    b2 = b.astype(jnp.float32).reshape(1, D)
    w_bf16 = w.astype(jnp.bfloat16)       # MXU-native; halves W HBM/VMEM bytes

    itemsize = x.dtype.itemsize
    w_stream = D * D * 2 if resident else n_row * D * D * 2
    cost = pl.CostEstimate(
        flops=2 * M_pad * D * D,
        transcendentals=0,
        bytes_accessed=2 * M_pad * D * itemsize + w_stream + D * 4,
    )

    if resident:
        out2 = pl.pallas_call(
            _residual_kernel_resident,
            out_shape=jax.ShapeDtypeStruct((M_pad, D), x.dtype),
            grid_spec=pltpu.PrefetchScalarGridSpec(
                num_scalar_prefetch=0,
                grid=(n_row,),
                in_specs=[
                    pl.BlockSpec((tm, D), lambda i: (i, 0)),            # x rows
                    # constant index_map -> fetched once; single buffer only
                    pl.BlockSpec((D, D), lambda i: (0, 0),
                                 pipeline_mode=pl.Buffered(1)),          # W bf16
                    pl.BlockSpec((1, D), lambda i: (0, 0),
                                 pipeline_mode=pl.Buffered(1)),          # bias
                ],
                out_specs=pl.BlockSpec((tm, D), lambda i: (i, 0)),
            ),
            compiler_params=pltpu.CompilerParams(
                dimension_semantics=("parallel",),
                vmem_limit_bytes=vmem_limit),
            cost_estimate=cost,
            # Each x tile is fully consumed before its output tile is written,
            # so aliasing x -> out is safe here (and ONLY here).
            input_output_aliases=({0: 0} if alias_input else {}),
        )(x2, w_bf16, b2)
    else:
        out2 = pl.pallas_call(
            functools.partial(_residual_kernel_coltile, tn=tn),
            out_shape=jax.ShapeDtypeStruct((M_pad, D), x.dtype),
            grid_spec=pltpu.PrefetchScalarGridSpec(
                num_scalar_prefetch=0,
                grid=(n_row, n_col),
                in_specs=[
                    pl.BlockSpec((tm, D), lambda i, j: (i, 0)),   # LHS + residual
                    pl.BlockSpec((D, tn), lambda i, j: (0, j)),   # W column slab
                    pl.BlockSpec((1, tn), lambda i, j: (0, j)),   # bias slab
                ],
                out_specs=pl.BlockSpec((tm, tn), lambda i, j: (i, j)),
                scratch_shapes=[pltpu.VMEM((tm, D), jnp.bfloat16)],
            ),
            compiler_params=pltpu.CompilerParams(
                # j carries the cached bf16 LHS in scratch -> keep it sequential
                dimension_semantics=("parallel", "arbitrary"),
                vmem_limit_bytes=vmem_limit),
            cost_estimate=cost,
        )(x2, w_bf16, b2)

    if M_pad != M:
        out2 = out2[:M]
    return out2.reshape(B, S, D)


def _reference(x, w, b):
    # Pure-JAX reference of Residual(Linear): fn(x) + x (full-precision matmul).
    y = jnp.einsum("bsd,de->bse", x.astype(jnp.float32), w,
                   precision=jax.lax.Precision.HIGHEST)
    return y + b + x.astype(jnp.float32)


if __name__ == "__main__":
    key = jax.random.PRNGKey(0)
    kx, kw, kb, kx2, kw2, kb2, kx3 = jax.random.split(key, 7)

    # --- small shape (matches the module's (batch, seq, hidden) use) ---
    B, S, D = 2, 8, 128
    x = jax.random.normal(kx, (B, S, D), dtype=jnp.float32)
    w = jax.random.normal(kw, (D, D), dtype=jnp.float32) * (1.0 / jnp.sqrt(D))
    b = jax.random.normal(kb, (D,), dtype=jnp.float32) * 0.02

    ref = _reference(x, w, b)
    out = jax.block_until_ready(residual_forward(x, w, b))
    assert out.shape == (B, S, D)
    # bf16 MXU operands (f32 accumulation) -> loosened tolerance vs f32 einsum.
    assert jnp.allclose(out, ref, atol=5e-2, rtol=5e-2), "mismatch (resident)"

    out_alias = jax.block_until_ready(residual_forward(x, w, b, alias_input=True))
    assert jnp.allclose(out_alias, ref, atol=5e-2, rtol=5e-2), "mismatch (aliased)"

    # --- larger shape: multi-row-tile grid + explicit column tiling ---
    B2, S2, D2 = 4, 256, 256
    x_l = jax.random.normal(kx2, (B2, S2, D2), dtype=jnp.float32)
    w_l = jax.random.normal(kw2, (D2, D2), dtype=jnp.float32) * (1.0 / jnp.sqrt(D2))
    b_l = jax.random.normal(kb2, (D2,), dtype=jnp.float32) * 0.02

    ref_l = _reference(x_l, w_l, b_l)
    out_l = jax.block_until_ready(residual_forward(x_l, w_l, b_l))
    assert jnp.allclose(out_l, ref_l, atol=5e-2, rtol=5e-2), "mismatch (tiled rows)"

    out_ct = jax.block_until_ready(residual_forward(x_l, w_l, b_l, tn=128))
    assert jnp.allclose(out_ct, ref_l, atol=5e-2, rtol=5e-2), "mismatch (column-tiled)"

    # --- awkward row count (M = 15, not a multiple of 8): pad + slice path ---
    B3, S3 = 3, 5
    x_a = jax.random.normal(kx3, (B3, S3, D), dtype=jnp.float32)
    ref_a = _reference(x_a, w, b)
    out_a = jax.block_until_ready(residual_forward(x_a, w, b))
    assert out_a.shape == (B3, S3, D)
    assert jnp.allclose(out_a, ref_a, atol=5e-2, rtol=5e-2), "mismatch (padded rows)"

    # --- bf16 activations (optional low-HBM-traffic path) ---
    x_h = x.astype(jnp.bfloat16)
    out_h = jax.block_until_ready(residual_forward(x_h, w, b))
    assert out_h.dtype == jnp.bfloat16
    assert jnp.allclose(out_h.astype(jnp.float32), _reference(x_h, w, b),
                        atol=1e-1, rtol=1e-1), "mismatch (bf16 activations)"

    print("KERNEL_OK")
</pallas_src>

<mosaic_0001>
module attributes {stable_mosaic.version = 11 : i64} {
  func.func @_residual_kernel_resident(%arg0: i32, %arg1: memref<16x128xf32, #tpu.memory_space<vmem>>, %arg2: memref<128x128xbf16, #tpu.memory_space<vmem>>, %arg3: memref<1x128xf32, #tpu.memory_space<vmem>>, %arg4: memref<16x128xf32, #tpu.memory_space<vmem>>) attributes {dimension_semantics = [#tpu.dimension_semantics<parallel>], iteration_bounds = array<i64: 1>, scalar_prefetch = 0 : i64, scratch_operands = 0 : i64, tpu.core_type = #tpu.core_type<tc>, window_params = [{transform_indices = @transform_0, window_bounds = array<i64: 16, 128>}, {pipeline_mode = #tpu.pipeline_mode<synchronous>, transform_indices = @transform_1, window_bounds = array<i64: 128, 128>}, {pipeline_mode = #tpu.pipeline_mode<synchronous>, transform_indices = @transform_2, window_bounds = array<i64: 1, 128>}, {transform_indices = @transform_3, window_bounds = array<i64: 16, 128>}]} {
    %c0 = arith.constant 0 : index
    %c0_0 = arith.constant 0 : index
    %0 = vector.load %arg1[%c0, %c0_0] : memref<16x128xf32, #tpu.memory_space<vmem>>, vector<16x128xf32>
    %1 = arith.truncf %0 : vector<16x128xf32> to vector<16x128xbf16>
    %c0_1 = arith.constant 0 : index
    %c0_2 = arith.constant 0 : index
    %2 = vector.load %arg2[%c0_1, %c0_2] : memref<128x128xbf16, #tpu.memory_space<vmem>>, vector<128x128xbf16>
    %cst = arith.constant dense<0.000000e+00> : vector<16x128xf32>
    %3 = tpu.matmul %1, %2, %cst {dimension_numbers = #tpu.dot_dimension_numbers<[1], [0], [0], [1], [0, 0, 1, 1], [], []>} : vector<16x128xbf16>, vector<128x128xbf16>, vector<16x128xf32> -> vector<16x128xf32>
    %c0_3 = arith.constant 0 : index
    %c0_4 = arith.constant 0 : index
    %4 = vector.load %arg3[%c0_3, %c0_4] : memref<1x128xf32, #tpu.memory_space<vmem>>, vector<1x128xf32>
    %5 = vector.broadcast %4 : vector<1x128xf32> to vector<16x128xf32>
    %6 = arith.addf %3, %5 : vector<16x128xf32>
    %7 = arith.addf %6, %0 : vector<16x128xf32>
    %c0_5 = arith.constant 0 : index
    %c0_6 = arith.constant 0 : index
    %8 = vector.load %arg4[%c0_5, %c0_6] : memref<16x128xf32, #tpu.memory_space<vmem>>, vector<16x128xf32>
    tpu.vector_store %arg4[%c0_5, %c0_6], %7 {strides = array<i32>} : memref<16x128xf32, #tpu.memory_space<vmem>>, vector<16x128xf32>,
    return
  }
  func.func @transform_0(%arg0: i32) -> (i32, i32) {
    %c0_i32 = arith.constant 0 : i32
    %c0_i32_0 = arith.constant 0 : i32
    return %arg0, %c0_i32 : i32, i32
  }
  func.func @transform_1(%arg0: i32) -> (i32, i32) {
    %c0_i32 = arith.constant 0 : i32
    %c0_i32_0 = arith.constant 0 : i32
    %c0_i32_1 = arith.constant 0 : i32
    return %c0_i32, %c0_i32_0 : i32, i32
  }
  func.func @transform_2(%arg0: i32) -> (i32, i32) {
    %c0_i32 = arith.constant 0 : i32
    %c0_i32_0 = arith.constant 0 : i32
    %c0_i32_1 = arith.constant 0 : i32
    return %c0_i32, %c0_i32_0 : i32, i32
  }
  func.func @transform_3(%arg0: i32) -> (i32, i32) {
    %c0_i32 = arith.constant 0 : i32
    %c0_i32_0 = arith.constant 0 : i32
    return %arg0, %c0_i32 : i32, i32
  }
}

</mosaic_0001>

<bundles_post_ra>
// kernel: residual_forward.1
= control target key start
LH: loop header
LB: loop body
LE: loop exit
PB: predicated region body
PF: predicated region fallthrough
CT: control target
= control target key end

     0   :  { %8 = vsyncpa [#allocation3], 0  ;;  %s426_s0 = inlined_call_operand.hbm [shape: f32[16,128], index: 0, kind: input, shape index: {}]   ;;  %s427_s1 = inlined_call_operand.hbm [shape: bf16[128,128], index: 1, kind: input, shape index: {}]   ;;  %s428_s2 = inlined_call_operand.hbm [shape: f32[1,128], index: 2, kind: input, shape index: {}]   ;;  %s429_s3 = inlined_call_operand.hbm [shape: f32[16,128], index: 3, kind: output, shape index: {}]  }
   0x1   :  { %9 = vsyncpa [#allocation6], 0 }
   0x2   :  { %10 = vsyncpa [#allocation4], 0  ;;  %s342_s12 = smov [#allocation5]   ;;  %s248_s16 = scalar_lea.hbm %s427_s1, 1024 }
   0x3   :  { %s28_s13 = sshll.u32 %s342_s12, 4  ;;  %p249_p0 = scmp.ne.s32.totalorder %s427_s1, %s248_s16  ;;  %s29_s13 = int_to_ptr.vmem [resolvable:$true] %s28_s13 }
   0x4   :  { %p252_p1 = scmp.lt.u32.totalorder %s248_s16, %s427_s1 }
   0x6   :  { %p254_p2 = pnand %p252_p1, %p249_p0 }
   0x8   :  { %257 = shalt.err (!%p254_p2)
}
   0x9   :  { %s258_s21 = scalar_lea.vmem %s29_s13, 1024  ;;  %p263_p4 = scmp.lt.s32.totalorder %s29_s13, %s29_s13 }
   0xa   :  { %p259_p3 = scmp.ne.s32.totalorder %s29_s13, %s258_s21  ;;  %p264_p5 = scmp.lt.s32.totalorder %s258_s21, %s258_s21 }
   0xc   :  { %p265_p6 = por %p264_p5, %p263_p4 }
   0xe   :  { %p266_p7 = pnand %p265_p6, %p259_p3 }
  0x10   :  { %269 = shalt.err (!%p266_p7)
}
  0x11   :  { %s343_s22 = smov 64   ;;  %s344_s23 = smov 4  }
  0x12   :  { %34 = dma.hbm_to_vmem [thread:$0]  %s427_s1, 1024, %s29_s13, [#allocation6], %s343_s22, %s343_s22, %s344_s23  }
  0x13   :  { %s345_s26 = smov [#allocation2]   ;;  %s270_s30 = scalar_lea.hbm %s426_s0, 256 }
  0x14   :  { %s16_s27 = sshll.u32 %s345_s26, 4  ;;  %p271_p8 = scmp.ne.s32.totalorder %s426_s0, %s270_s30  ;;  %s17_s27 = int_to_ptr.vmem [resolvable:$true] %s16_s27 }
  0x15   :  { %p274_p9 = scmp.lt.u32.totalorder %s270_s30, %s426_s0 }
  0x17   :  { %p276_p10 = pnand %p274_p9, %p271_p8 }
  0x19   :  { %279 = shalt.err (!%p276_p10)
}
  0x1a   :  { %s280_s8 = scalar_lea.vmem %s17_s27, 256  ;;  %p285_p12 = scmp.lt.s32.totalorder %s17_s27, %s17_s27 }
  0x1b   :  { %p281_p11 = scmp.ne.s32.totalorder %s17_s27, %s280_s8  ;;  %p286_p13 = scmp.lt.s32.totalorder %s280_s8, %s280_s8 }
  0x1d   :  { %p287_p0 = por %p286_p13, %p285_p12 }
  0x1f   :  { %p288_p1 = pnand %p287_p0, %p281_p11 }
  0x21   :  { %291 = shalt.err (!%p288_p1)
}
  0x22   :  { %s346_s1 = smov 128   ;;  %s347_s9 = smov 8  }
  0x23   :  { %22 = dma.hbm_to_vmem [thread:$0]  %s426_s0, 256, %s17_s27, [#allocation3], %s346_s1, %s346_s1, %s347_s9  }
  0x24   :  { %s348_s12 = smov [#allocation7]   ;;  %s292_s16 = scalar_lea.hbm %s428_s2, 16 }
  0x25   :  { %s41_s13 = sshll.u32 %s348_s12, 4  ;;  %p293_p2 = scmp.ne.s32.totalorder %s428_s2, %s292_s16  ;;  %s42_s13 = int_to_ptr.vmem [resolvable:$true] %s41_s13 }
  0x26   :  { %p296_p3 = scmp.lt.u32.totalorder %s292_s16, %s428_s2 }
  0x28   :  { %p298_p4 = pnand %p296_p3, %p293_p2 }
  0x2a   :  { %301 = shalt.err (!%p298_p4)
}
  0x2b   :  { %s302_s21 = scalar_lea.vmem %s42_s13, 16  ;;  %s306_s0 = scalar_lea.vmem %s42_s13, 32 }
  0x2c   :  { %p303_p5 = scmp.ne.s32.totalorder %s42_s13, %s302_s21  ;;  %p307_p6 = scmp.lt.s32.totalorder %s42_s13, %s42_s13 }
  0x2d   :  { %p308_p7 = scmp.lt.s32.totalorder %s306_s0, %s302_s21 }
  0x2f   :  { %p309_p8 = por %p308_p7, %p307_p6 }
  0x31   :  { %p310_p9 = pnand %p309_p8, %p303_p5 }
  0x33   :  { %313 = shalt.err (!%p310_p9)
}
  0x34   :  { %44 = dma.hbm_to_vmem [thread:$0]  %s428_s2, 16, %s42_s13, [#allocation6]  }
  0x35   :  { %336 = dma.done.wait [#allocation3], 256  }
  0x36   :  { %337 = vsyncadd [#allocation3], 4294967040 }
  0x37   :  { %338 = dma.done.wait [#allocation6], 1040  }
  0x38   :  { %339 = vsyncadd [#allocation6], 4294966256  ;;  %v349_v0 = vmov 0.0   ;;  %vm350_vm0 = vmmov 0   ;;  %v240_v1 = vld [vmem:[#allocation5] sm:$0xff]   ;;  %v241_v2 = vld [vmem:[#allocation5 + $0x8] sm:$0xff]  }
  0x39   :  { %210 = vmatprep.subr.bf16.mxu0 %v349_v0  ;;  %226 = vmatprep.mubr.msk.bf16.mxu0 %vm350_vm0, %v349_v0  ;;  %v242_v3 = vld [vmem:[#allocation5 + $0x10] sm:$0xff]   ;;  %v243_v4 = vld [vmem:[#allocation5 + $0x18] sm:$0xff]   ;;  %v244_v5 = vld [vmem:[#allocation5 + $0x20] sm:$0xff]   ;;  %s351_s2 = smov [#allocation8]  }
  0x3a   :  { %211 = vmatpush3.bf16.msra.mxu0 %v240_v1  ;;  %v245_v6 = vld [vmem:[#allocation5 + $0x28] sm:$0xff]   ;;  %v246_v7 = vld [vmem:[#allocation5 + $0x30] sm:$0xff]   ;;  %v247_v8 = vld [vmem:[#allocation5 + $0x38] sm:$0xff]   ;;  %s179_s24 = sshll.u32 %s351_s2, 4  ;;  %s180_s24 = int_to_ptr.vmem [resolvable:$true] %s179_s24 }
  0x3b   :  { %212 = vmatprep.subr.bf16.mxu0 %v349_v0  ;;  %v55_v9 = vld [vmem:[#allocation2] sm:$0xff]  ;;  %v56_v10 = vld [vmem:[#allocation2 + $0x8] sm:$0xff]  ;;  %v192_v12 = vld [vmem:[#allocation7] ss:$0 sm:$0xff]  ;;  %s314_s25 = scalar_lea.vmem %s180_s24, 256  ;;  %p319_p11 = scmp.lt.s32.totalorder %s180_s24, %s180_s24 }
  0x3c   :  { %v57_v11 = vpack.c.bf16 %v56_v10, %v55_v9  ;;  %p315_p10 = scmp.ne.s32.totalorder %s180_s24, %s314_s25  ;;  %p320_p12 = scmp.lt.s32.totalorder %s314_s25, %s314_s25 }
  0x3e   :  { %213 = vmatpush3.bf16.msra.mxu0 %v241_v2  ;;  %p321_p13 = por %p320_p12, %p319_p11 }
  0x3f   :  { %214 = vmatprep.subr.bf16.mxu0 %v349_v0 }
  0x40   :  { %p322_p0 = pnand %p321_p13, %p315_p10 }
  0x42   :  { %215 = vmatpush3.bf16.msra.mxu0 %v242_v3 }
  0x43   :  { %216 = vmatprep.subr.bf16.mxu0 %v349_v0 }
  0x46   :  { %217 = vmatpush3.bf16.msra.mxu0 %v243_v4 }
  0x47   :  { %218 = vmatprep.subr.bf16.mxu0 %v349_v0 }
  0x4a   :  { %219 = vmatpush3.bf16.msra.mxu0 %v244_v5 }
  0x4b   :  { %220 = vmatprep.subr.bf16.mxu0 %v349_v0 }
  0x4e   :  { %221 = vmatpush3.bf16.msra.mxu0 %v245_v6 }
  0x4f   :  { %222 = vmatprep.subr.bf16.mxu0 %v349_v0 }
  0x52   :  { %223 = vmatpush3.bf16.msra.mxu0 %v246_v7 }
  0x53   :  { %224 = vmatprep.subr.bf16.mxu0 %v349_v0 }
  0x56   :  { %225 = vmatpush3.bf16.msra.mxu0 %v247_v8 }
  0x59   :  { %227 = vmatmul.mubr.bf16.vlgmr.msra.gmra.mrb[0].mxu0 %v57_v11 }
 0x12c   :  { %v163_v13 = vpop.f32.mrb[0].mxu0 }
 0x12d   :  { %v164_v14 = vadd.f32 %v192_v12, %v163_v13  ;;  %v228_v15 = vpop.f32.mrb[1].mxu0 }
 0x12e   :  { %v166_v16 = vpop.f32.mrb[2].mxu0 }
 0x12f   :  { %v170_v17 = vadd.f32 %v164_v14, %v55_v9  ;;  %v167_v18 = vadd.f32 %v192_v12, %v166_v16  ;;  %v229_v19 = vpop.f32.mrb[3].mxu0 }
 0x131   :  { %172 = vst [vmem:[#allocation8] sm:$0xff] %v170_v17  ;;  %v171_v20 = vadd.f32 %v167_v18, %v56_v10 }
 0x133   :  { %173 = vst [vmem:[#allocation8 + $0x8] sm:$0xff] %v171_v20 }
 0x134   :  { %325 = shalt.err (!%p322_p0)
}
 0x135   :  { %s326_s28 = scalar_lea.hbm %s429_s3, 256 }
 0x136   :  { %p327_p1 = scmp.ne.s32.totalorder %s429_s3, %s326_s28  ;;  %p330_p2 = scmp.lt.u32.totalorder %s326_s28, %s429_s3 }
 0x138   :  { %p332_p3 = pnand %p330_p2, %p327_p1 }
 0x13a   :  { %335 = shalt.err (!%p332_p3)
}
 0x13b   :  { %185 = dma.vmem_to_hbm [thread:$0]  %s180_s24, 256, %s429_s3, [#allocation4], %s346_s1, %s346_s1, %s347_s9  }
 0x13c   :  { %340 = dma.done.wait [#allocation4], 256  }
 0x13d   :  { %341 = vsyncadd [#allocation4], 4294967040 }
 0x13e   :  { %189 = vsyncpa [#allocation3], 1 }
 0x13f   :  { %190 = vsyncpa [#allocation6], 1 }
 0x140   :  { %191 = vsyncpa [#allocation4], 1 }

</bundles_post_ra>
